<compile_context>
chip_gen: v6e
topology: v6e:2x2x1
jax: 0.10.0
libtpu: 0.0.40
codegen_flags: <defaults>
</compile_context>

<pallas_src>
import math

import jax
import jax.numpy as jnp
from jax import lax
from jax.experimental import pallas as pl
from jax.experimental.pallas import tpu as pltpu

HIDDEN = 64        # hidden_dim of SimpleDecoder
IN_DIM = 6         # cat([w_i, w_o], -1) with 3-dim directions
DIR_DIM = 3
OUT_DIM = 3
PACK_DIM = 8       # padded feature rows of the packed input slab (6 real + 2 zero)
SUB_TILE = 512     # in-kernel lane sub-tile (keeps the layer chain vreg-friendly)
LANE_ALIGN = SUB_TILE
MAX_TILE_N = 8192  # samples (lane columns) per grid step


def _round_up(x, m):
    return ((x + m - 1) // m) * m


def _mlp_kernel(x_ref,
                w1_ref, b1_ref,
                w2_ref, b2_ref,
                w3_ref, b3_ref,
                w4_ref, b4_ref,
                w5_ref, b5_ref,
                o_ref):
    """Whole 5-layer MLP (4x ReLU) for one column tile, fully in VMEM.

    Transposed layout (features on sublanes, samples on lanes):
      x : (8, T) f32 (rows 0-2 = w_i, 3-5 = w_o, 6-7 zero)
      w_k : (out_k, in_k)    b_k : (out_k, 1)
    so each layer is h_out = W @ h_in + b.  An inner loop over SUB_TILE-wide
    column sub-tiles keeps each sub-tile's activation chain small enough to
    avoid VMEM round-trips between layers.
    """
    n_sub = x_ref.shape[-1] // SUB_TILE

    def body(j, carry):
        col = pl.multiple_of(j * SUB_TILE, SUB_TILE)
        x = x_ref[:, pl.ds(col, SUB_TILE)]                      # (8, S) f32

        # Layer 1: fused 8 -> 64 (concat-free, padded rows are zero).
        h = jnp.dot(w1_ref[...], x,
                    preferred_element_type=jnp.float32) + b1_ref[...]
        h = jnp.maximum(h, 0.0)

        # Layer 2: 64 -> 64.
        h = jnp.dot(w2_ref[...], h,
                    preferred_element_type=jnp.float32) + b2_ref[...]
        h = jnp.maximum(h, 0.0)

        # Layer 3: 64 -> 64.
        h = jnp.dot(w3_ref[...], h,
                    preferred_element_type=jnp.float32) + b3_ref[...]
        h = jnp.maximum(h, 0.0)

        # Layer 4: 64 -> 6.
        h = jnp.dot(w4_ref[...], h,
                    preferred_element_type=jnp.float32) + b4_ref[...]
        h = jnp.maximum(h, 0.0)

        # Layer 5: 6 -> 3 (no activation).
        h = jnp.dot(w5_ref[...], h,
                    preferred_element_type=jnp.float32) + b5_ref[...]

        o_ref[:, pl.ds(col, SUB_TILE)] = h.astype(o_ref.dtype)
        return carry

    lax.fori_loop(0, n_sub, body, 0)


def _resident(shape):
    # Whole (small) parameter array as a single block, same block for every
    # grid step -> stays resident in VMEM across the column loop.
    return pl.BlockSpec(shape, lambda i: (0,) * len(shape))


@jax.jit
def simple_decoder_forward(w_i, w_o, params):
    """params: w1..w5 stored as (in, out), b1..b5 stored as (out,)."""
    lead_shape = w_i.shape[:-1]
    n = math.prod(lead_shape) if lead_shape else 1

    # Samples-on-lanes layout, packed into a single (8, n_pad) slab.
    xi = w_i.reshape(n, DIR_DIM)
    xo = w_o.reshape(n, DIR_DIM)
    x6 = jnp.concatenate([xi, xo], axis=-1).T                   # (6, n) f32

    # Tile selection: big tiles to amortise per-step overhead, but keep at
    # least 2 grid steps when possible so both v7x TensorCores stay busy.
    half = _round_up(-(-n // 2), LANE_ALIGN)
    tile = min(MAX_TILE_N, _round_up(n, LANE_ALIGN), max(half, LANE_ALIGN))
    n_pad = _round_up(n, tile)
    grid = (n_pad // tile,)

    x_slab = jnp.pad(x6, ((0, PACK_DIM - IN_DIM), (0, n_pad - n)))  # (8, n_pad)

    # Kernel-layout parameters: W stored (out, in) so the kernel does W @ x.
    w1f = jnp.pad(params["w1"].T, ((0, 0), (0, PACK_DIM - IN_DIM)))  # (64, 8)
    b1 = params["b1"].reshape(-1, 1)
    w2 = params["w2"].T                                              # (64, 64)
    b2 = params["b2"].reshape(-1, 1)
    w3 = params["w3"].T                                              # (64, 64)
    b3 = params["b3"].reshape(-1, 1)
    w4 = params["w4"].T                                              # (6, 64)
    b4 = params["b4"].reshape(-1, 1)
    w5 = params["w5"].T                                              # (3, 6)
    b5 = params["b5"].reshape(-1, 1)

    weights = (w1f, b1, w2, b2, w3, b3, w4, b4, w5, b5)

    in_specs = ([pl.BlockSpec((PACK_DIM, tile), lambda i: (0, i))]
                + [_resident(w.shape) for w in weights])
    out_spec = pl.BlockSpec((OUT_DIM, tile), lambda i: (0, i))

    flops_per_col = 2 * (PACK_DIM * HIDDEN + 2 * HIDDEN * HIDDEN
                         + HIDDEN * IN_DIM + IN_DIM * OUT_DIM)
    weight_bytes = sum(int(w.size) * w.dtype.itemsize for w in weights)
    cost = pl.CostEstimate(
        flops=flops_per_col * n_pad,
        transcendentals=0,
        bytes_accessed=n_pad * (PACK_DIM + OUT_DIM) * 4 + weight_bytes,
    )

    out = pl.pallas_call(
        _mlp_kernel,
        out_shape=jax.ShapeDtypeStruct((OUT_DIM, n_pad), jnp.float32),
        grid_spec=pltpu.PrefetchScalarGridSpec(
            num_scalar_prefetch=0,
            grid=grid,
            in_specs=in_specs,
            out_specs=out_spec,
        ),
        compiler_params=pltpu.CompilerParams(
            dimension_semantics=("parallel",)),
        cost_estimate=cost,
    )(x_slab, *weights)

    # Un-pad + transpose back; XLA fuses this into a single copy.
    # TODO(synk): downstream consumers could accept (3, N) channels-first
    # output and skip this copy entirely.
    return out[:, :n].T.reshape(*lead_shape, OUT_DIM)


def init_params(key, hidden_dim=HIDDEN):
    """Deterministic synthetic parameters matching SimpleDecoder.__init__ shapes."""
    dims = [(IN_DIM, hidden_dim),
            (hidden_dim, hidden_dim),
            (hidden_dim, hidden_dim),
            (hidden_dim, IN_DIM),
            (IN_DIM, OUT_DIM)]
    params = {}
    for idx, (fan_in, fan_out) in enumerate(dims, start=1):
        key, kw, kb = jax.random.split(key, 3)
        scale = 1.0 / jnp.sqrt(jnp.float32(fan_in))
        params[f"w{idx}"] = (jax.random.normal(kw, (fan_in, fan_out), jnp.float32)
                             * scale)
        params[f"b{idx}"] = (jax.random.normal(kb, (fan_out,), jnp.float32)
                             * scale)
    return params


def _reference_forward(w_i, w_o, params):
    """Pure-JAX f32 reference of the PyTorch forward pass."""
    z = jnp.concatenate([w_i, w_o], axis=-1)
    h = jnp.maximum(z @ params["w1"] + params["b1"], 0.0)
    h = jnp.maximum(h @ params["w2"] + params["b2"], 0.0)
    h = jnp.maximum(h @ params["w3"] + params["b3"], 0.0)
    h = jnp.maximum(h @ params["w4"] + params["b4"], 0.0)
    return h @ params["w5"] + params["b5"]


if __name__ == "__main__":
    key = jax.random.PRNGKey(0)
    kp, ki, ko = jax.random.split(key, 3)

    params = init_params(kp)

    # Small example: 2 x 100 rays, 3-D incoming/outgoing directions.
    w_i = jax.random.normal(ki, (2, 100, 3), jnp.float32)
    w_o = jax.random.normal(ko, (2, 100, 3), jnp.float32)

    out = simple_decoder_forward(w_i, w_o, params)
    out = jax.block_until_ready(out)

    ref = _reference_forward(w_i, w_o, params)
    assert out.shape == (2, 100, 3), out.shape
    # Everything is f32 now; only summation-order differences remain.
    assert jnp.allclose(out, ref, atol=1e-4, rtol=1e-4), "mismatch vs reference"

    print("KERNEL_OK")
</pallas_src>

<mosaic_0001>
module attributes {stable_mosaic.version = 11 : i64} {
  func.func @_mlp_kernel(%arg0: i32, %arg1: memref<8x512xf32, #tpu.memory_space<vmem>>, %arg2: memref<64x8xf32, #tpu.memory_space<vmem>>, %arg3: memref<64x1xf32, #tpu.memory_space<vmem>>, %arg4: memref<64x64xf32, #tpu.memory_space<vmem>>, %arg5: memref<64x1xf32, #tpu.memory_space<vmem>>, %arg6: memref<64x64xf32, #tpu.memory_space<vmem>>, %arg7: memref<64x1xf32, #tpu.memory_space<vmem>>, %arg8: memref<6x64xf32, #tpu.memory_space<vmem>>, %arg9: memref<6x1xf32, #tpu.memory_space<vmem>>, %arg10: memref<3x6xf32, #tpu.memory_space<vmem>>, %arg11: memref<3x1xf32, #tpu.memory_space<vmem>>, %arg12: memref<3x512xf32, #tpu.memory_space<vmem>>) attributes {dimension_semantics = [#tpu.dimension_semantics<parallel>], iteration_bounds = array<i64: 1>, scalar_prefetch = 0 : i64, scratch_operands = 0 : i64, tpu.core_type = #tpu.core_type<tc>, window_params = [{transform_indices = @transform_0, window_bounds = array<i64: 8, 512>}, {pipeline_mode = #tpu.pipeline_mode<synchronous>, transform_indices = @transform_1, window_bounds = array<i64: 64, 8>}, {pipeline_mode = #tpu.pipeline_mode<synchronous>, transform_indices = @transform_2, window_bounds = array<i64: 64, 1>}, {pipeline_mode = #tpu.pipeline_mode<synchronous>, transform_indices = @transform_3, window_bounds = array<i64: 64, 64>}, {pipeline_mode = #tpu.pipeline_mode<synchronous>, transform_indices = @transform_4, window_bounds = array<i64: 64, 1>}, {pipeline_mode = #tpu.pipeline_mode<synchronous>, transform_indices = @transform_5, window_bounds = array<i64: 64, 64>}, {pipeline_mode = #tpu.pipeline_mode<synchronous>, transform_indices = @transform_6, window_bounds = array<i64: 64, 1>}, {pipeline_mode = #tpu.pipeline_mode<synchronous>, transform_indices = @transform_7, window_bounds = array<i64: 6, 64>}, {pipeline_mode = #tpu.pipeline_mode<synchronous>, transform_indices = @transform_8, window_bounds = array<i64: 6, 1>}, {pipeline_mode = #tpu.pipeline_mode<synchronous>, transform_indices = @transform_9, window_bounds = array<i64: 3, 6>}, {pipeline_mode = #tpu.pipeline_mode<synchronous>, transform_indices = @transform_10, window_bounds = array<i64: 3, 1>}, {transform_indices = @transform_11, window_bounds = array<i64: 3, 512>}]} {
    %c0_i32 = arith.constant 0 : i32
    %c512_i32 = arith.constant 512 : i32
    %0 = arith.muli %c0_i32, %c512_i32 : i32
    %1 = tpu.assume_multiple %0, 512 : i32
    %c0 = arith.constant 0 : index
    %2 = arith.index_cast %1 : i32 to index
    %3 = vector.load %arg1[%c0, %2] : memref<8x512xf32, #tpu.memory_space<vmem>>, vector<8x512xf32>
    %c0_0 = arith.constant 0 : index
    %c0_1 = arith.constant 0 : index
    %4 = vector.load %arg2[%c0_0, %c0_1] : memref<64x8xf32, #tpu.memory_space<vmem>>, vector<64x8xf32>
    %cst = arith.constant dense<0.000000e+00> : vector<64x512xf32>
    %5 = tpu.matmul %4, %3, %cst {dimension_numbers = #tpu.dot_dimension_numbers<[1], [0], [0], [1], [0, 0, 1, 1], [], []>} : vector<64x8xf32>, vector<8x512xf32>, vector<64x512xf32> -> vector<64x512xf32>
    %c0_2 = arith.constant 0 : index
    %c0_3 = arith.constant 0 : index
    %6 = vector.load %arg3[%c0_2, %c0_3] : memref<64x1xf32, #tpu.memory_space<vmem>>, vector<64x1xf32>
    %7 = vector.broadcast %6 : vector<64x1xf32> to vector<64x512xf32>
    %8 = arith.addf %5, %7 : vector<64x512xf32>
    %cst_4 = arith.constant 0.000000e+00 : f32
    %9 = vector.broadcast %cst_4 : f32 to vector<64x512xf32>
    %10 = arith.maximumf %8, %9 : vector<64x512xf32>
    %c0_5 = arith.constant 0 : index
    %c0_6 = arith.constant 0 : index
    %11 = vector.load %arg4[%c0_5, %c0_6] : memref<64x64xf32, #tpu.memory_space<vmem>>, vector<64x64xf32>
    %cst_7 = arith.constant dense<0.000000e+00> : vector<64x512xf32>
    %12 = tpu.matmul %11, %10, %cst_7 {dimension_numbers = #tpu.dot_dimension_numbers<[1], [0], [0], [1], [0, 0, 1, 1], [], []>} : vector<64x64xf32>, vector<64x512xf32>, vector<64x512xf32> -> vector<64x512xf32>
    %c0_8 = arith.constant 0 : index
    %c0_9 = arith.constant 0 : index
    %13 = vector.load %arg5[%c0_8, %c0_9] : memref<64x1xf32, #tpu.memory_space<vmem>>, vector<64x1xf32>
    %14 = vector.broadcast %13 : vector<64x1xf32> to vector<64x512xf32>
    %15 = arith.addf %12, %14 : vector<64x512xf32>
    %cst_10 = arith.constant 0.000000e+00 : f32
    %16 = vector.broadcast %cst_10 : f32 to vector<64x512xf32>
    %17 = arith.maximumf %15, %16 : vector<64x512xf32>
    %c0_11 = arith.constant 0 : index
    %c0_12 = arith.constant 0 : index
    %18 = vector.load %arg6[%c0_11, %c0_12] : memref<64x64xf32, #tpu.memory_space<vmem>>, vector<64x64xf32>
    %cst_13 = arith.constant dense<0.000000e+00> : vector<64x512xf32>
    %19 = tpu.matmul %18, %17, %cst_13 {dimension_numbers = #tpu.dot_dimension_numbers<[1], [0], [0], [1], [0, 0, 1, 1], [], []>} : vector<64x64xf32>, vector<64x512xf32>, vector<64x512xf32> -> vector<64x512xf32>
    %c0_14 = arith.constant 0 : index
    %c0_15 = arith.constant 0 : index
    %20 = vector.load %arg7[%c0_14, %c0_15] : memref<64x1xf32, #tpu.memory_space<vmem>>, vector<64x1xf32>
    %21 = vector.broadcast %20 : vector<64x1xf32> to vector<64x512xf32>
    %22 = arith.addf %19, %21 : vector<64x512xf32>
    %cst_16 = arith.constant 0.000000e+00 : f32
    %23 = vector.broadcast %cst_16 : f32 to vector<64x512xf32>
    %24 = arith.maximumf %22, %23 : vector<64x512xf32>
    %c0_17 = arith.constant 0 : index
    %c0_18 = arith.constant 0 : index
    %25 = vector.load %arg8[%c0_17, %c0_18] : memref<6x64xf32, #tpu.memory_space<vmem>>, vector<6x64xf32>
    %cst_19 = arith.constant dense<0.000000e+00> : vector<6x512xf32>
    %26 = tpu.matmul %25, %24, %cst_19 {dimension_numbers = #tpu.dot_dimension_numbers<[1], [0], [0], [1], [0, 0, 1, 1], [], []>} : vector<6x64xf32>, vector<64x512xf32>, vector<6x512xf32> -> vector<6x512xf32>
    %c0_20 = arith.constant 0 : index
    %c0_21 = arith.constant 0 : index
    %27 = vector.load %arg9[%c0_20, %c0_21] : memref<6x1xf32, #tpu.memory_space<vmem>>, vector<6x1xf32>
    %28 = vector.broadcast %27 : vector<6x1xf32> to vector<6x512xf32>
    %29 = arith.addf %26, %28 : vector<6x512xf32>
    %cst_22 = arith.constant 0.000000e+00 : f32
    %30 = vector.broadcast %cst_22 : f32 to vector<6x512xf32>
    %31 = arith.maximumf %29, %30 : vector<6x512xf32>
    %c0_23 = arith.constant 0 : index
    %c0_24 = arith.constant 0 : index
    %32 = vector.load %arg10[%c0_23, %c0_24] : memref<3x6xf32, #tpu.memory_space<vmem>>, vector<3x6xf32>
    %cst_25 = arith.constant dense<0.000000e+00> : vector<3x512xf32>
    %33 = tpu.matmul %32, %31, %cst_25 {dimension_numbers = #tpu.dot_dimension_numbers<[1], [0], [0], [1], [0, 0, 1, 1], [], []>} : vector<3x6xf32>, vector<6x512xf32>, vector<3x512xf32> -> vector<3x512xf32>
    %c0_26 = arith.constant 0 : index
    %c0_27 = arith.constant 0 : index
    %34 = vector.load %arg11[%c0_26, %c0_27] : memref<3x1xf32, #tpu.memory_space<vmem>>, vector<3x1xf32>
    %35 = vector.broadcast %34 : vector<3x1xf32> to vector<3x512xf32>
    %36 = arith.addf %33, %35 : vector<3x512xf32>
    %c0_28 = arith.constant 0 : index
    %37 = arith.index_cast %1 : i32 to index
    %38 = vector.load %arg12[%c0_28, %37] : memref<3x512xf32, #tpu.memory_space<vmem>>, vector<3x512xf32>
    tpu.vector_store %arg12[%c0_28, %37], %36 {strides = array<i32>} : memref<3x512xf32, #tpu.memory_space<vmem>>, vector<3x512xf32>,
    %c1_i32 = arith.constant 1 : i32
    return
  }
  func.func @transform_0(%arg0: i32) -> (i32, i32) {
    %c0_i32 = arith.constant 0 : i32
    %c0_i32_0 = arith.constant 0 : i32
    return %c0_i32, %arg0 : i32, i32
  }
  func.func @transform_1(%arg0: i32) -> (i32, i32) {
    %c0_i32 = arith.constant 0 : i32
    %c0_i32_0 = arith.constant 0 : i32
    %c0_i32_1 = arith.constant 0 : i32
    return %c0_i32, %c0_i32_0 : i32, i32
  }
  func.func @transform_2(%arg0: i32) -> (i32, i32) {
    %c0_i32 = arith.constant 0 : i32
    %c0_i32_0 = arith.constant 0 : i32
    %c0_i32_1 = arith.constant 0 : i32
    return %c0_i32, %c0_i32_0 : i32, i32
  }
  func.func @transform_3(%arg0: i32) -> (i32, i32) {
    %c0_i32 = arith.constant 0 : i32
    %c0_i32_0 = arith.constant 0 : i32
    %c0_i32_1 = arith.constant 0 : i32
    return %c0_i32, %c0_i32_0 : i32, i32
  }
  func.func @transform_4(%arg0: i32) -> (i32, i32) {
    %c0_i32 = arith.constant 0 : i32
    %c0_i32_0 = arith.constant 0 : i32
    %c0_i32_1 = arith.constant 0 : i32
    return %c0_i32, %c0_i32_0 : i32, i32
  }
  func.func @transform_5(%arg0: i32) -> (i32, i32) {
    %c0_i32 = arith.constant 0 : i32
    %c0_i32_0 = arith.constant 0 : i32
    %c0_i32_1 = arith.constant 0 : i32
    return %c0_i32, %c0_i32_0 : i32, i32
  }
  func.func @transform_6(%arg0: i32) -> (i32, i32) {
    %c0_i32 = arith.constant 0 : i32
    %c0_i32_0 = arith.constant 0 : i32
    %c0_i32_1 = arith.constant 0 : i32
    return %c0_i32, %c0_i32_0 : i32, i32
  }
  func.func @transform_7(%arg0: i32) -> (i32, i32) {
    %c0_i32 = arith.constant 0 : i32
    %c0_i32_0 = arith.constant 0 : i32
    %c0_i32_1 = arith.constant 0 : i32
    return %c0_i32, %c0_i32_0 : i32, i32
  }
  func.func @transform_8(%arg0: i32) -> (i32, i32) {
    %c0_i32 = arith.constant 0 : i32
    %c0_i32_0 = arith.constant 0 : i32
    %c0_i32_1 = arith.constant 0 : i32
    return %c0_i32, %c0_i32_0 : i32, i32
  }
  func.func @transform_9(%arg0: i32) -> (i32, i32) {
    %c0_i32 = arith.constant 0 : i32
    %c0_i32_0 = arith.constant 0 : i32
    %c0_i32_1 = arith.constant 0 : i32
    return %c0_i32, %c0_i32_0 : i32, i32
  }
  func.func @transform_10(%arg0: i32) -> (i32, i32) {
    %c0_i32 = arith.constant 0 : i32
    %c0_i32_0 = arith.constant 0 : i32
    %c0_i32_1 = arith.constant 0 : i32
    return %c0_i32, %c0_i32_0 : i32, i32
  }
  func.func @transform_11(%arg0: i32) -> (i32, i32) {
    %c0_i32 = arith.constant 0 : i32
    %c0_i32_0 = arith.constant 0 : i32
    return %c0_i32, %arg0 : i32, i32
  }
}

</mosaic_0001>

<bundles_post_ra>
// kernel: simple_decoder_forward.1
= control target key start
LH: loop header
LB: loop body
LE: loop exit
PB: predicated region body
PF: predicated region fallthrough
CT: control target
= control target key end

     0   :  { %v1454_v3 = vmov 0.0   ;;  %vm98_vm0 = vcmask 64512   ;;  %v1455_v9 = vmov 0   ;;  %vm437_vm1 = vcmask 523264   ;;  %s1900_s0 = inlined_call_operand.vmem [shape: f32[8,512], index: 0, kind: input, shape index: {}]   ;;  %s1901_s1 = inlined_call_operand.vmem [shape: f32[64,8], index: 1, kind: input, shape index: {}]   ;;  %s1902_s2 = inlined_call_operand.vmem [shape: f32[64,1], index: 2, kind: input, shape index: {}]   ;;  %s1903_s4 = inlined_call_operand.vmem [shape: f32[64,1], index: 4, kind: input, shape index: {}]   ;;  %s1904_s6 = inlined_call_operand.vmem [shape: f32[64,1], index: 6, kind: input, shape index: {}]   ;;  %s1905_s8 = inlined_call_operand.vmem [shape: f32[6,1], index: 8, kind: input, shape index: {}]   ;;  %s1906_s10 = inlined_call_operand.vmem [shape: f32[3,1], index: 10, kind: input, shape index: {}]   ;;  %s1907_s3 = inlined_call_operand.vmem [shape: f32[64,64], index: 3, kind: input, shape index: {}]   ;;  %s1908_s5 = inlined_call_operand.vmem [shape: f32[64,64], index: 5, kind: input, shape index: {}]   ;;  %s1909_s7 = inlined_call_operand.vmem [shape: f32[6,64], index: 7, kind: input, shape index: {}]   ;;  %s1910_s9 = inlined_call_operand.vmem [shape: f32[3,6], index: 9, kind: input, shape index: {}]   ;;  %s1911_s11 = inlined_call_operand.vmem [shape: f32[3,512], index: 11, kind: output, shape index: {}]  }
   0x1   :  { %v39_v0 = vld [vmem:[%s1900_s0 + $0x8] sm:$0xff]  ;;  %v41_v1 = vld [vmem:[%s1900_s0 + $0x18] sm:$0xff]  ;;  %v38_v2 = vld [vmem:[%s1900_s0] sm:$0xff]  ;;  %187 = vmatprep.mubr.f32.mxu0 %v1454_v3  ;;  %300 = vmatprep.mubr.f32.mxu1 %v1454_v3  ;;  %vm1225_vm2 = vcmask 1045504   ;;  %vm1221_vm3 = vcmask 48128  }
   0x2   :  { %153 = vmatprep.subr.mxu0 %v39_v0  ;;  %266 = vmatprep.subr.mxu1 %v41_v1  ;;  %v40_v4 = vld [vmem:[%s1900_s0 + $0x10] sm:$0xff]  ;;  %v42_v5 = vld [vmem:[%s1901_s1] sm:$0xff]  ;;  %v43_v6 = vld [vmem:[%s1901_s1 + $0x8] sm:$0xff] }
   0x3   :  { %154 = vmatpush1.msra.mxu0 %v38_v2  ;;  %267 = vmatpush1.msra.mxu1 %v40_v4  ;;  %v57_v7 = vld [vmem:[%s1902_s2 + $0x38] sm:$0xff]  ;;  %v55_v8 = vld [vmem:[%s1902_s2 + $0x28] sm:$0xff]  ;;  %v56_v10 = vld [vmem:[%s1902_s2 + $0x30] sm:$0xff] }
   0x4   :  { %1394 = vmatmul.mubr.msk.f32.vlgmr.msra.gmra.mxu0 %vm98_vm0, %v42_v5  ;;  %1402 = vmatmul.mubr.msk.f32.vlgmr.msra.gmra.mxu1 %vm98_vm0, %v42_v5  ;;  %v54_v11 = vld [vmem:[%s1902_s2 + $0x20] sm:$0xff]  ;;  %v44_v12 = vld [vmem:[%s1901_s1 + $0x10] sm:$0xff]  ;;  %v53_v13 = vld [vmem:[%s1902_s2 + $0x18] sm:$0xff] }
   0x5   :  { %193 = vmatprep.mubr.f32.mxu0 %v1454_v3  ;;  %306 = vmatprep.mubr.f32.mxu1 %v1454_v3  ;;  %v52_v14 = vld [vmem:[%s1902_s2 + $0x10] sm:$0xff]  ;;  %v45_v15 = vld [vmem:[%s1901_s1 + $0x18] sm:$0xff]  ;;  %v51_v16 = vld [vmem:[%s1902_s2 + $0x8] sm:$0xff] }
   0x6   :  { %1452 = vset.pattern.permute.xlu0 %v1455_v9  ;;  %1453 = vset.pattern.permute.xlu1 %v1455_v9  ;;  %v50_v17 = vld [vmem:[%s1902_s2] sm:$0xff]  ;;  %v396_v19 = vld [vmem:[%s1903_s4 + $0x38] sm:$0xff]  ;;  %v395_v20 = vld [vmem:[%s1903_s4 + $0x30] sm:$0xff] }
   0x7   :  { %95 = vperm.xlu0 %1452, %v57_v7   ;;  %85 = vperm.xlu1 %1453, %v55_v8   ;;  %v46_v18 = vld [vmem:[%s1901_s1 + $0x20] sm:$0xff]  ;;  %v47_v21 = vld [vmem:[%s1901_s1 + $0x28] sm:$0xff]  ;;  %v48_v24 = vld [vmem:[%s1901_s1 + $0x30] sm:$0xff] }
   0x8   :  { %1395 = vmatmul.mubr.msk.f32.gmra.mxu0 %vm98_vm0, %v43_v6  ;;  %1403 = vmatmul.mubr.msk.f32.gmra.mxu1 %vm98_vm0, %v43_v6  ;;  %v394_v22 = vld [vmem:[%s1903_s4 + $0x28] sm:$0xff]  ;;  %v393_v23 = vld [vmem:[%s1903_s4 + $0x20] sm:$0xff]  ;;  %v392_v25 = vld [vmem:[%s1903_s4 + $0x18] sm:$0xff] }
   0x9   :  { %199 = vmatprep.mubr.f32.mxu0 %v1454_v3  ;;  %312 = vmatprep.mubr.f32.mxu1 %v1454_v3  ;;  %v391_v26 = vld [vmem:[%s1903_s4 + $0x10] sm:$0xff]  ;;  %v49_v27 = vld [vmem:[%s1901_s1 + $0x38] sm:$0xff]  ;;  %v390_v28 = vld [vmem:[%s1903_s4 + $0x8] sm:$0xff] }
   0xa   :  { %v389_v29 = vld [vmem:[%s1903_s4] sm:$0xff]  ;;  %v735_v30 = vld [vmem:[%s1904_s6 + $0x38] sm:$0xff]  ;;  %v734_v31 = vld [vmem:[%s1904_s6 + $0x30] sm:$0xff] }
   0xb   :  { %90 = vperm.xlu0 %1452, %v56_v10   ;;  %80 = vperm.xlu1 %1453, %v54_v11   ;;  %v733_v32 = vld [vmem:[%s1904_s6 + $0x28] sm:$0xff]  ;;  %v732_v33 = vld [vmem:[%s1904_s6 + $0x20] sm:$0xff]  ;;  %v731_v34 = vld [vmem:[%s1904_s6 + $0x18] sm:$0xff] }
   0xc   :  { %1396 = vmatmul.mubr.msk.f32.gmra.mxu0 %vm98_vm0, %v44_v12  ;;  %1404 = vmatmul.mubr.msk.f32.gmra.mxu1 %vm98_vm0, %v44_v12  ;;  %v730_v35 = vld [vmem:[%s1904_s6 + $0x10] sm:$0xff]  ;;  %v729_v36 = vld [vmem:[%s1904_s6 + $0x8] sm:$0xff]  ;;  %v728_v37 = vld [vmem:[%s1904_s6] sm:$0xff] }
   0xd   :  { %205 = vmatprep.mubr.f32.mxu0 %v1454_v3  ;;  %318 = vmatprep.mubr.f32.mxu1 %v1454_v3  ;;  %v1059_v38 = vld [vmem:[%s1905_s8] sm:$0x3f] }
   0xe   :  { %v1215_v39 = vld [vmem:[%s1906_s10] sm:$0x7] }
   0xf   :  { %75 = vperm.xlu0 %1452, %v53_v13   ;;  %70 = vperm.xlu1 %1453, %v52_v14  }
  0x10   :  { %1397 = vmatmul.mubr.msk.f32.gmra.mxu0 %vm98_vm0, %v45_v15  ;;  %1405 = vmatmul.mubr.msk.f32.gmra.mxu1 %vm98_vm0, %v45_v15 }
  0x11   :  { %211 = vmatprep.mubr.f32.mxu0 %v1454_v3  ;;  %324 = vmatprep.mubr.f32.mxu1 %v1454_v3 }
  0x13   :  { %65 = vperm.xlu0 %1452, %v51_v16   ;;  %60 = vperm.xlu1 %1453, %v50_v17  }
  0x14   :  { %1398 = vmatmul.mubr.msk.f32.gmra.mxu0 %vm98_vm0, %v46_v18  ;;  %1406 = vmatmul.mubr.msk.f32.gmra.mxu1 %vm98_vm0, %v46_v18 }
  0x15   :  { %217 = vmatprep.mubr.f32.mxu0 %v1454_v3  ;;  %330 = vmatprep.mubr.f32.mxu1 %v1454_v3 }
  0x17   :  { %434 = vperm.xlu0 %1452, %v396_v19   ;;  %429 = vperm.xlu1 %1453, %v395_v20  }
  0x18   :  { %1399 = vmatmul.mubr.msk.f32.gmra.mxu0 %vm98_vm0, %v47_v21  ;;  %1407 = vmatmul.mubr.msk.f32.gmra.mxu1 %vm98_vm0, %v47_v21 }
  0x19   :  { %223 = vmatprep.mubr.f32.mxu0 %v1454_v3  ;;  %336 = vmatprep.mubr.f32.mxu1 %v1454_v3 }
  0x1b   :  { %424 = vperm.xlu0 %1452, %v394_v22   ;;  %419 = vperm.xlu1 %1453, %v393_v23  }
  0x1c   :  { %1400 = vmatmul.mubr.msk.f32.gmra.mxu0 %vm98_vm0, %v48_v24  ;;  %1408 = vmatmul.mubr.msk.f32.gmra.mxu1 %vm98_vm0, %v48_v24 }
  0x1d   :  { %229 = vmatprep.mubr.f32.mxu0 %v1454_v3  ;;  %342 = vmatprep.mubr.f32.mxu1 %v1454_v3 }
  0x1f   :  { %414 = vperm.xlu0 %1452, %v392_v25   ;;  %409 = vperm.xlu1 %1453, %v391_v26  }
  0x20   :  { %1401 = vmatmul.mubr.msk.f32.gmra.mxu0 %vm98_vm0, %v49_v27  ;;  %1409 = vmatmul.mubr.msk.f32.gmra.mxu1 %vm98_vm0, %v49_v27 }
  0x21   :  { %526 = vmatprep.mubr.f32.mxu0 %v1454_v3  ;;  %639 = vmatprep.mubr.f32.mxu1 %v1454_v3 }
  0x23   :  { %404 = vperm.xlu0 %1452, %v390_v28   ;;  %399 = vperm.xlu1 %1453, %v389_v29  }
  0x27   :  { %773 = vperm.xlu0 %1452, %v735_v30   ;;  %768 = vperm.xlu1 %1453, %v734_v31  }
  0x2b   :  { %763 = vperm.xlu0 %1452, %v733_v32   ;;  %758 = vperm.xlu1 %1453, %v732_v33  }
  0x2f   :  { %753 = vperm.xlu0 %1452, %v731_v34   ;;  %748 = vperm.xlu1 %1453, %v730_v35  }
  0x33   :  { %743 = vperm.xlu0 %1452, %v729_v36   ;;  %738 = vperm.xlu1 %1453, %v728_v37  }
  0x37   :  { %1062 = vperm.xlu0 %1452, %v1059_v38   ;;  %1218 = vperm.xlu1 %1453, %v1215_v39  }
  0x82   :  { %v96_v62 = vpop.permute.xlu0 %95  ;;  %v86_v1 = vpop.permute.xlu1 %85 }
  0x86   :  { %v91_v7 = vpop.permute.xlu0 %90  ;;  %v81_v10 = vpop.permute.xlu1 %80 }
  0x8a   :  { %v76_v25 = vpop.permute.xlu0 %75  ;;  %v71_v34 = vpop.permute.xlu1 %70 }
  0xc4   :  { %v1664_v40 = vpop.f32.mrf.mxu0  ;;  %v1666_v41 = vpop.f32.mrf.mxu1 }
  0xc6   :  { %v1668_v42 = vpop.f32.mrf.mxu0  ;;  %v1670_v43 = vpop.f32.mrf.mxu1 }
  0xc8   :  { %v1672_v44 = vpop.f32.mrf.mxu0  ;;  %v1674_v45 = vpop.f32.mrf.mxu1 }
  0xca   :  { %v1676_v46 = vpop.f32.mrf.mxu0  ;;  %v1678_v47 = vpop.f32.mrf.mxu1 }
  0xcc   :  { %v1680_v48 = vpop.f32.mrf.mxu0  ;;  %v1682_v49 = vpop.f32.mrf.mxu1 }
  0xce   :  { %v1684_v50 = vpop.f32.mrf.mxu0  ;;  %v1686_v51 = vpop.f32.mrf.mxu1 }
  0xd0   :  { %v207_v52 = vpop.f32.mrf.mxu0  ;;  %v320_v53 = vpop.f32.mrf.mxu1 }
  0xd2   :  { %v209_v54 = vpop.f32.mrf.mxu0  ;;  %v322_v55 = vpop.f32.mrf.mxu1 }
  0xd3   :  { %v210_v39 = vadd.f32 %v209_v54, %v76_v25  ;;  %v66_v54 = vpop.permute.xlu0 %65 }
  0xd4   :  { %v213_v56 = vpop.f32.mrf.mxu0  ;;  %v326_v57 = vpop.f32.mrf.mxu1 }
  0xd5   :  { %v214_v35 = vadd.f32 %v213_v56, %v81_v10  ;;  %v327_v36 = vadd.f32 %v326_v57, %v81_v10  ;;  %v317_v56 = vadd.f32 %v1686_v51, %v71_v34  ;;  %v61_v51 = vpop.permute.xlu1 %60 }
  0xd6   :  { %v215_v58 = vpop.f32.mrf.mxu0  ;;  %v328_v59 = vpop.f32.mrf.mxu1 }
  0xd7   :  { %v216_v30 = vadd.f32 %v215_v58, %v81_v10  ;;  %v329_v31 = vadd.f32 %v328_v59, %v81_v10  ;;  %v321_v58 = vadd.f32 %v320_v53, %v76_v25  ;;  %v198_v53 = vadd.f32 %v1676_v46, %v66_v54 }
  0xd8   :  { %v219_v60 = vpop.f32.mrf.mxu0  ;;  %v332_v61 = vpop.f32.mrf.mxu1 }
  0xd9   :  { %v220_v26 = vadd.f32 %v219_v60, %v86_v1  ;;  %v333_v27 = vadd.f32 %v332_v61, %v86_v1  ;;  %v208_v61 = vadd.f32 %v207_v52, %v76_v25  ;;  %v366_v57 = vmax.f32 %v216_v30, 0.0 }
  0xda   :  { %v221_v63 = vpop.f32.mrf.mxu0  ;;  %v334_v0 = vpop.f32.mrf.mxu1  ;;  %v367_v52 = vmax.f32 %v327_v36, 0.0  ;;  %v363_v10 = vmax.f32 %v321_v58, 0.0 }
  0xdb   :  { %v222_v21 = vadd.f32 %v221_v63, %v86_v1  ;;  %v335_v22 = vadd.f32 %v334_v0, %v86_v1  ;;  %v369_v59 = vmax.f32 %v220_v26, 0.0  ;;  %v371_v0 = vmax.f32 %v333_v27, 0.0 }
  0xdc   :  { %v225_v2 = vpop.f32.mrf.mxu0  ;;  %v338_v4 = vpop.f32.mrf.mxu1  ;;  %v204_v1 = vadd.f32 %v1684_v50, %v71_v34  ;;  %v362_v50 = vmax.f32 %v210_v39, 0.0 }
  0xdd   :  { %v226_v19 = vadd.f32 %v225_v2, %v91_v7  ;;  %v339_v20 = vadd.f32 %v338_v4, %v91_v7  ;;  %v370_v63 = vmax.f32 %v222_v21, 0.0  ;;  %v372_v60 = vmax.f32 %v335_v22, 0.0  ;;  %v384_v21 = vld [vmem:[%s1907_s3 + $0x18] sm:$0xff]  ;;  %v385_v22 = vld [vmem:[%s1907_s3 + $0x20] sm:$0xff] }
  0xde   :  { %v227_v5 = vpop.f32.mrf.mxu0  ;;  %v340_v6 = vpop.f32.mrf.mxu1  ;;  %v368_v2 = vmax.f32 %v329_v31, 0.0  ;;  %v315_v4 = vadd.f32 %v1682_v49, %v71_v34  ;;  %v192_v49 = vadd.f32 %v1668_v42, %v61_v51  ;;  %v358_v46 = vmax.f32 %v204_v1, 0.0 }
  0xdf   :  { %v228_v15 = vadd.f32 %v227_v5, %v91_v7  ;;  %v341_v16 = vadd.f32 %v340_v6, %v91_v7  ;;  %v373_v37 = vmax.f32 %v226_v19, 0.0  ;;  %v375_v38 = vmax.f32 %v339_v20, 0.0  ;;  %v382_v19 = vld [vmem:[%s1907_s3 + $0x8] sm:$0xff]  ;;  %v383_v20 = vld [vmem:[%s1907_s3 + $0x10] sm:$0xff] }
  0xe0   :  { %v231_v8 = vpop.f32.mrf.mxu0  ;;  %v344_v9 = vpop.f32.mrf.mxu1  ;;  %v365_v5 = vmax.f32 %v214_v35, 0.0  ;;  %v311_v6 = vadd.f32 %v1678_v47, %v66_v54  ;;  %v190_v47 = vadd.f32 %v1664_v40, %v61_v51 }
  0xe1   :  { %v232_v11 = vadd.f32 %v231_v8, %v96_v62  ;;  %v345_v12 = vadd.f32 %v344_v9, %v96_v62  ;;  %v374_v32 = vmax.f32 %v228_v15, 0.0  ;;  %v376_v33 = vmax.f32 %v341_v16, 0.0 }
  0xe2   :  { %v233_v13 = vpop.f32.mrf.mxu0  ;;  %v346_v14 = vpop.f32.mrf.mxu1  ;;  %v196_v8 = vadd.f32 %v1672_v44, %v66_v54  ;;  %v309_v9 = vadd.f32 %v1674_v45, %v66_v54  ;;  %v359_v44 = vmax.f32 %v315_v4, 0.0  ;;  %v354_v45 = vmax.f32 %v198_v53, 0.0 }
  0xe3   :  { %v234_v17 = vadd.f32 %v233_v13, %v96_v62  ;;  %v347_v18 = vadd.f32 %v346_v14, %v96_v62  ;;  %v377_v28 = vmax.f32 %v232_v11, 0.0  ;;  %v379_v29 = vmax.f32 %v345_v12, 0.0  ;;  %v430_v54 = vpop.permute.xlu1 %429 }
  0xe4   :  { %v323_v62 = vadd.f32 %v322_v55, %v76_v25  ;;  %v202_v55 = vadd.f32 %v1680_v48, %v71_v34  ;;  %v361_v48 = vmax.f32 %v208_v61, 0.0  ;;  %v305_v11 = vadd.f32 %v1670_v43, %v61_v51  ;;  %v388_v25 = vld [vmem:[%s1907_s3 + $0x38] sm:$0xff] }
  0xe5   :  { %v378_v23 = vmax.f32 %v234_v17, 0.0  ;;  %v380_v24 = vmax.f32 %v347_v18, 0.0  ;;  %v360_v12 = vmax.f32 %v317_v56, 0.0  ;;  %v303_v13 = vadd.f32 %v1666_v41, %v61_v51  ;;  %v381_v41 = vld [vmem:[%s1907_s3] sm:$0xff]  ;;  %v435_v56 = vpop.permute.xlu0 %434 }
  0xe6   :  { %v364_v7 = vmax.f32 %v323_v62, 0.0  ;;  %v357_v14 = vmax.f32 %v202_v55, 0.0  ;;  %v356_v15 = vmax.f32 %v311_v6, 0.0  ;;  %v353_v16 = vmax.f32 %v196_v8, 0.0 }
  0xe7   :  { %478 = vmatprep.subr.mxu0 %v378_v23  ;;  %591 = vmatprep.subr.mxu1 %v380_v24  ;;  %v355_v42 = vmax.f32 %v309_v9, 0.0  ;;  %v350_v43 = vmax.f32 %v192_v49, 0.0  ;;  %v352_v17 = vmax.f32 %v305_v11, 0.0  ;;  %v349_v18 = vmax.f32 %v190_v47, 0.0  ;;  %v386_v23 = vld [vmem:[%s1907_s3 + $0x28] sm:$0xff]  ;;  %v387_v24 = vld [vmem:[%s1907_s3 + $0x30] sm:$0xff] }
  0xe8   :  { %479 = vmatpush1.msra.mxu0 %v377_v28  ;;  %592 = vmatpush1.msra.mxu1 %v379_v29  ;;  %v351_v40 = vmax.f32 %v303_v13, 0.0 }
  0xe9   :  { %480 = vmatprep.subr.mxu0 %v374_v32  ;;  %593 = vmatprep.subr.mxu1 %v376_v33  ;;  %v425_v53 = vpop.permute.xlu0 %424 }
  0xea   :  { %481 = vmatpush1.msra.mxu0 %v373_v37  ;;  %594 = vmatpush1.msra.mxu1 %v375_v38 }
  0xeb   :  { %482 = vmatprep.subr.mxu0 %v370_v63  ;;  %595 = vmatprep.subr.mxu1 %v372_v60 }
  0xec   :  { %483 = vmatpush1.msra.mxu0 %v369_v59  ;;  %596 = vmatpush1.msra.mxu1 %v371_v0 }
  0xed   :  { %484 = vmatprep.subr.mxu0 %v366_v57  ;;  %597 = vmatprep.subr.mxu1 %v368_v2 }
  0xee   :  { %485 = vmatpush1.msra.mxu0 %v365_v5  ;;  %598 = vmatpush1.msra.mxu1 %v367_v52 }
  0xef   :  { %486 = vmatprep.subr.mxu0 %v362_v50  ;;  %599 = vmatprep.subr.mxu1 %v364_v7  ;;  %v420_v7 = vpop.permute.xlu1 %419 }
  0xf0   :  { %487 = vmatpush1.msra.mxu0 %v361_v48  ;;  %600 = vmatpush1.msra.mxu1 %v363_v10 }
  0xf1   :  { %488 = vmatprep.subr.mxu0 %v358_v46  ;;  %601 = vmatprep.subr.mxu1 %v360_v12 }
  0xf2   :  { %489 = vmatpush1.msra.mxu0 %v357_v14  ;;  %602 = vmatpush1.msra.mxu1 %v359_v44 }
  0xf3   :  { %490 = vmatprep.subr.mxu0 %v354_v45  ;;  %603 = vmatprep.subr.mxu1 %v356_v15  ;;  %v415_v15 = vpop.permute.xlu0 %414 }
  0xf4   :  { %491 = vmatpush1.msra.mxu0 %v353_v16  ;;  %604 = vmatpush1.msra.mxu1 %v355_v42 }
  0xf5   :  { %492 = vmatprep.subr.mxu0 %v350_v43  ;;  %605 = vmatprep.subr.mxu1 %v352_v17 }
  0xf6   :  { %493 = vmatpush1.msra.mxu0 %v349_v18  ;;  %606 = vmatpush1.msra.mxu1 %v351_v40 }
  0xf7   :  { %1410 = vmatmul.mubr.msk.f32.vlgmr.msra.gmra.mxu0 %vm437_vm1, %v381_v41  ;;  %1418 = vmatmul.mubr.msk.f32.vlgmr.msra.gmra.mxu1 %vm437_vm1, %v381_v41 }
  0xf8   :  { %532 = vmatprep.mubr.f32.mxu0 %v1454_v3  ;;  %645 = vmatprep.mubr.f32.mxu1 %v1454_v3 }
  0xfb   :  { %1411 = vmatmul.mubr.msk.f32.gmra.mxu0 %vm437_vm1, %v382_v19  ;;  %1419 = vmatmul.mubr.msk.f32.gmra.mxu1 %vm437_vm1, %v382_v19 }
  0xfc   :  { %538 = vmatprep.mubr.f32.mxu0 %v1454_v3  ;;  %651 = vmatprep.mubr.f32.mxu1 %v1454_v3 }
  0xff   :  { %1412 = vmatmul.mubr.msk.f32.gmra.mxu0 %vm437_vm1, %v383_v20  ;;  %1420 = vmatmul.mubr.msk.f32.gmra.mxu1 %vm437_vm1, %v383_v20  ;;  %v410_v20 = vpop.permute.xlu1 %409 }
 0x100   :  { %544 = vmatprep.mubr.f32.mxu0 %v1454_v3  ;;  %657 = vmatprep.mubr.f32.mxu1 %v1454_v3 }
 0x103   :  { %1413 = vmatmul.mubr.msk.f32.gmra.mxu0 %vm437_vm1, %v384_v21  ;;  %1421 = vmatmul.mubr.msk.f32.gmra.mxu1 %vm437_vm1, %v384_v21 }
 0x104   :  { %550 = vmatprep.mubr.f32.mxu0 %v1454_v3  ;;  %663 = vmatprep.mubr.f32.mxu1 %v1454_v3 }
 0x107   :  { %1414 = vmatmul.mubr.msk.f32.gmra.mxu0 %vm437_vm1, %v385_v22  ;;  %1422 = vmatmul.mubr.msk.f32.gmra.mxu1 %vm437_vm1, %v385_v22 }
 0x108   :  { %556 = vmatprep.mubr.f32.mxu0 %v1454_v3  ;;  %669 = vmatprep.mubr.f32.mxu1 %v1454_v3 }
 0x10b   :  { %1415 = vmatmul.mubr.msk.f32.gmra.mxu0 %vm437_vm1, %v386_v23  ;;  %1423 = vmatmul.mubr.msk.f32.gmra.mxu1 %vm437_vm1, %v386_v23 }
 0x10c   :  { %562 = vmatprep.mubr.f32.mxu0 %v1454_v3  ;;  %675 = vmatprep.mubr.f32.mxu1 %v1454_v3 }
 0x10f   :  { %1416 = vmatmul.mubr.msk.f32.gmra.mxu0 %vm437_vm1, %v387_v24  ;;  %1424 = vmatmul.mubr.msk.f32.gmra.mxu1 %vm437_vm1, %v387_v24 }
 0x110   :  { %568 = vmatprep.mubr.f32.mxu0 %v1454_v3  ;;  %681 = vmatprep.mubr.f32.mxu1 %v1454_v3 }
 0x113   :  { %1417 = vmatmul.mubr.msk.f32.gmra.mxu0 %vm437_vm1, %v388_v25  ;;  %1425 = vmatmul.mubr.msk.f32.gmra.mxu1 %vm437_vm1, %v388_v25 }
 0x114   :  { %864 = vmatprep.mubr.f32.mxu0 %v1454_v3  ;;  %977 = vmatprep.mubr.f32.mxu1 %v1454_v3 }
 0x1b7   :  { %v1756_v26 = vpop.f32.mrf.mxu0  ;;  %v1758_v27 = vpop.f32.mrf.mxu1 }
 0x1b9   :  { %v1760_v28 = vpop.f32.mrf.mxu0  ;;  %v1762_v29 = vpop.f32.mrf.mxu1 }
 0x1bb   :  { %v1764_v30 = vpop.f32.mrf.mxu0  ;;  %v1766_v31 = vpop.f32.mrf.mxu1 }
 0x1bd   :  { %v1768_v32 = vpop.f32.mrf.mxu0  ;;  %v1770_v33 = vpop.f32.mrf.mxu1 }
 0x1bf   :  { %v1772_v34 = vpop.f32.mrf.mxu0  ;;  %v1774_v35 = vpop.f32.mrf.mxu1 }
 0x1c1   :  { %v1776_v36 = vpop.f32.mrf.mxu0  ;;  %v1778_v37 = vpop.f32.mrf.mxu1 }
 0x1c3   :  { %v546_v38 = vpop.f32.mrf.mxu0  ;;  %v659_v39 = vpop.f32.mrf.mxu1 }
 0x1c5   :  { %v548_v62 = vpop.f32.mrf.mxu0  ;;  %v661_v63 = vpop.f32.mrf.mxu1 }
 0x1c6   :  { %v549_v25 = vadd.f32 %v548_v62, %v415_v15  ;;  %v405_v62 = vpop.permute.xlu0 %404 }
 0x1c7   :  { %v552_v60 = vpop.f32.mrf.mxu0  ;;  %v665_v61 = vpop.f32.mrf.mxu1 }
 0x1c8   :  { %v553_v21 = vadd.f32 %v552_v60, %v420_v7  ;;  %v666_v22 = vadd.f32 %v665_v61, %v420_v7  ;;  %v656_v60 = vadd.f32 %v1778_v37, %v410_v20  ;;  %v400_v37 = vpop.permute.xlu1 %399 }
 0x1c9   :  { %v554_v58 = vpop.f32.mrf.mxu0  ;;  %v667_v59 = vpop.f32.mrf.mxu1 }
 0x1ca   :  { %v555_v18 = vadd.f32 %v554_v58, %v420_v7  ;;  %v668_v40 = vadd.f32 %v667_v59, %v420_v7  ;;  %v660_v58 = vadd.f32 %v659_v39, %v415_v15  ;;  %v537_v39 = vadd.f32 %v1768_v32, %v405_v62 }
 0x1cb   :  { %v558_v0 = vpop.f32.mrf.mxu0  ;;  %v671_v1 = vpop.f32.mrf.mxu1 }
 0x1cc   :  { %v559_v16 = vadd.f32 %v558_v0, %v425_v53  ;;  %v672_v42 = vadd.f32 %v671_v1, %v425_v53  ;;  %v547_v1 = vadd.f32 %v546_v38, %v415_v15  ;;  %v705_v61 = vmax.f32 %v555_v18, 0.0 }
 0x1cd   :  { %v560_v57 = vpop.f32.mrf.mxu0  ;;  %v673_v2 = vpop.f32.mrf.mxu1  ;;  %v706_v38 = vmax.f32 %v666_v22, 0.0  ;;  %v702_v7 = vmax.f32 %v660_v58, 0.0 }
 0x1ce   :  { %v561_v13 = vadd.f32 %v560_v57, %v425_v53  ;;  %v674_v14 = vadd.f32 %v673_v2, %v425_v53  ;;  %v708_v59 = vmax.f32 %v559_v16, 0.0  ;;  %v710_v2 = vmax.f32 %v672_v42, 0.0 }
 0x1cf   :  { %v564_v55 = vpop.f32.mrf.mxu0  ;;  %v677_v4 = vpop.f32.mrf.mxu1 }
 0x1d0   :  { %v565_v12 = vadd.f32 %v564_v55, %v430_v54  ;;  %v678_v47 = vadd.f32 %v677_v4, %v430_v54  ;;  %v709_v57 = vmax.f32 %v561_v13, 0.0  ;;  %v711_v0 = vmax.f32 %v674_v14, 0.0  ;;  %v723_v13 = vld [vmem:[%s1908_s5 + $0x18] sm:$0xff]  ;;  %v724_v14 = vld [vmem:[%s1908_s5 + $0x20] sm:$0xff] }
 0x1d1   :  { %v566_v5 = vpop.f32.mrf.mxu0  ;;  %v679_v52 = vpop.f32.mrf.mxu1  ;;  %v707_v55 = vmax.f32 %v668_v40, 0.0  ;;  %v654_v4 = vadd.f32 %v1774_v35, %v410_v20  ;;  %v531_v35 = vadd.f32 %v1760_v28, %v400_v37 }
 0x1d2   :  { %v567_v10 = vadd.f32 %v566_v5, %v430_v54  ;;  %v680_v49 = vadd.f32 %v679_v52, %v430_v54  ;;  %v712_v23 = vmax.f32 %v565_v12, 0.0  ;;  %v714_v24 = vmax.f32 %v678_v47, 0.0  ;;  %v721_v12 = vld [vmem:[%s1908_s5 + $0x8] sm:$0xff]  ;;  %v722_v47 = vld [vmem:[%s1908_s5 + $0x10] sm:$0xff] }
 0x1d3   :  { %v570_v6 = vpop.f32.mrf.mxu0  ;;  %v683_v50 = vpop.f32.mrf.mxu1  ;;  %v543_v54 = vadd.f32 %v1776_v36, %v410_v20  ;;  %v704_v5 = vmax.f32 %v553_v21, 0.0  ;;  %v650_v52 = vadd.f32 %v1770_v33, %v405_v62  ;;  %v701_v36 = vmax.f32 %v549_v25, 0.0 }
 0x1d4   :  { %v571_v51 = vadd.f32 %v570_v6, %v435_v56  ;;  %v684_v8 = vadd.f32 %v683_v50, %v435_v56  ;;  %v713_v41 = vmax.f32 %v567_v10, 0.0  ;;  %v715_v19 = vmax.f32 %v680_v49, 0.0 }
 0x1d5   :  { %v572_v9 = vpop.f32.mrf.mxu0  ;;  %v685_v48 = vpop.f32.mrf.mxu1  ;;  %v535_v6 = vadd.f32 %v1764_v30, %v405_v62  ;;  %v648_v50 = vadd.f32 %v1766_v31, %v405_v62  ;;  %v697_v32 = vmax.f32 %v543_v54, 0.0  ;;  %v529_v33 = vadd.f32 %v1756_v26, %v400_v37 }
 0x1d6   :  { %v573_v11 = vadd.f32 %v572_v9, %v435_v56  ;;  %v686_v46 = vadd.f32 %v685_v48, %v435_v56  ;;  %v716_v43 = vmax.f32 %v571_v51, 0.0  ;;  %v718_v17 = vmax.f32 %v684_v8, 0.0  ;;  %v769_v62 = vpop.permute.xlu1 %768 }
 0x1d7   :  { %v662_v56 = vadd.f32 %v661_v63, %v415_v15  ;;  %v541_v63 = vadd.f32 %v1772_v34, %v410_v20  ;;  %v700_v34 = vmax.f32 %v547_v1, 0.0  ;;  %v644_v51 = vadd.f32 %v1762_v29, %v400_v37  ;;  %v727_v15 = vld [vmem:[%s1908_s5 + $0x38] sm:$0xff] }
 0x1d8   :  { %v717_v44 = vmax.f32 %v573_v11, 0.0  ;;  %v719_v45 = vmax.f32 %v686_v46, 0.0  ;;  %v699_v8 = vmax.f32 %v656_v60, 0.0  ;;  %v642_v9 = vadd.f32 %v1758_v27, %v400_v37  ;;  %v720_v27 = vld [vmem:[%s1908_s5] sm:$0xff]  ;;  %v774_v60 = vpop.permute.xlu0 %773 }
 0x1d9   :  { %v703_v53 = vmax.f32 %v662_v56, 0.0  ;;  %v696_v48 = vmax.f32 %v541_v63, 0.0  ;;  %v698_v30 = vmax.f32 %v654_v4, 0.0  ;;  %v693_v31 = vmax.f32 %v537_v39, 0.0 }
 0x1da   :  { %816 = vmatprep.subr.mxu0 %v717_v44  ;;  %929 = vmatprep.subr.mxu1 %v719_v45  ;;  %v695_v10 = vmax.f32 %v650_v52, 0.0  ;;  %v692_v49 = vmax.f32 %v535_v6, 0.0  ;;  %v694_v28 = vmax.f32 %v648_v50, 0.0  ;;  %v689_v29 = vmax.f32 %v531_v35, 0.0  ;;  %v725_v44 = vld [vmem:[%s1908_s5 + $0x28] sm:$0xff]  ;;  %v726_v45 = vld [vmem:[%s1908_s5 + $0x30] sm:$0xff] }
 0x1db   :  { %817 = vmatpush1.msra.mxu0 %v716_v43  ;;  %930 = vmatpush1.msra.mxu1 %v718_v17  ;;  %v691_v11 = vmax.f32 %v644_v51, 0.0  ;;  %v688_v46 = vmax.f32 %v529_v33, 0.0  ;;  %v690_v26 = vmax.f32 %v642_v9, 0.0 }
 0x1dc   :  { %818 = vmatprep.subr.mxu0 %v713_v41  ;;  %931 = vmatprep.subr.mxu1 %v715_v19  ;;  %v764_v39 = vpop.permute.xlu0 %763 }
 0x1dd   :  { %819 = vmatpush1.msra.mxu0 %v712_v23  ;;  %932 = vmatpush1.msra.mxu1 %v714_v24 }
 0x1de   :  { %820 = vmatprep.subr.mxu0 %v709_v57  ;;  %933 = vmatprep.subr.mxu1 %v711_v0 }
 0x1df   :  { %821 = vmatpush1.msra.mxu0 %v708_v59  ;;  %934 = vmatpush1.msra.mxu1 %v710_v2 }
 0x1e0   :  { %822 = vmatprep.subr.mxu0 %v705_v61  ;;  %935 = vmatprep.subr.mxu1 %v707_v55 }
 0x1e1   :  { %823 = vmatpush1.msra.mxu0 %v704_v5  ;;  %936 = vmatpush1.msra.mxu1 %v706_v38 }
 0x1e2   :  { %824 = vmatprep.subr.mxu0 %v701_v36  ;;  %937 = vmatprep.subr.mxu1 %v703_v53  ;;  %v759_v53 = vpop.permute.xlu1 %758 }
 0x1e3   :  { %825 = vmatpush1.msra.mxu0 %v700_v34  ;;  %938 = vmatpush1.msra.mxu1 %v702_v7 }
 0x1e4   :  { %826 = vmatprep.subr.mxu0 %v697_v32  ;;  %939 = vmatprep.subr.mxu1 %v699_v8 }
 0x1e5   :  { %827 = vmatpush1.msra.mxu0 %v696_v48  ;;  %940 = vmatpush1.msra.mxu1 %v698_v30 }
 0x1e6   :  { %828 = vmatprep.subr.mxu0 %v693_v31  ;;  %941 = vmatprep.subr.mxu1 %v695_v10  ;;  %v754_v10 = vpop.permute.xlu0 %753 }
 0x1e7   :  { %829 = vmatpush1.msra.mxu0 %v692_v49  ;;  %942 = vmatpush1.msra.mxu1 %v694_v28 }
 0x1e8   :  { %830 = vmatprep.subr.mxu0 %v689_v29  ;;  %943 = vmatprep.subr.mxu1 %v691_v11 }
 0x1e9   :  { %831 = vmatpush1.msra.mxu0 %v688_v46  ;;  %944 = vmatpush1.msra.mxu1 %v690_v26 }
 0x1ea   :  { %1426 = vmatmul.mubr.msk.f32.vlgmr.msra.gmra.mxu0 %vm437_vm1, %v720_v27  ;;  %1434 = vmatmul.mubr.msk.f32.vlgmr.msra.gmra.mxu1 %vm437_vm1, %v720_v27 }
 0x1eb   :  { %870 = vmatprep.mubr.f32.mxu0 %v1454_v3  ;;  %983 = vmatprep.mubr.f32.mxu1 %v1454_v3 }
 0x1ee   :  { %1427 = vmatmul.mubr.msk.f32.gmra.mxu0 %vm437_vm1, %v721_v12  ;;  %1435 = vmatmul.mubr.msk.f32.gmra.mxu1 %vm437_vm1, %v721_v12 }
 0x1ef   :  { %876 = vmatprep.mubr.f32.mxu0 %v1454_v3  ;;  %989 = vmatprep.mubr.f32.mxu1 %v1454_v3 }
 0x1f2   :  { %1428 = vmatmul.mubr.msk.f32.gmra.mxu0 %vm437_vm1, %v722_v47  ;;  %1436 = vmatmul.mubr.msk.f32.gmra.mxu1 %vm437_vm1, %v722_v47  ;;  %v749_v47 = vpop.permute.xlu1 %748 }
 0x1f3   :  { %882 = vmatprep.mubr.f32.mxu0 %v1454_v3  ;;  %995 = vmatprep.mubr.f32.mxu1 %v1454_v3 }
 0x1f6   :  { %1429 = vmatmul.mubr.msk.f32.gmra.mxu0 %vm437_vm1, %v723_v13  ;;  %1437 = vmatmul.mubr.msk.f32.gmra.mxu1 %vm437_vm1, %v723_v13 }
 0x1f7   :  { %888 = vmatprep.mubr.f32.mxu0 %v1454_v3  ;;  %1001 = vmatprep.mubr.f32.mxu1 %v1454_v3 }
 0x1fa   :  { %1430 = vmatmul.mubr.msk.f32.gmra.mxu0 %vm437_vm1, %v724_v14  ;;  %1438 = vmatmul.mubr.msk.f32.gmra.mxu1 %vm437_vm1, %v724_v14 }
 0x1fb   :  { %894 = vmatprep.mubr.f32.mxu0 %v1454_v3  ;;  %1007 = vmatprep.mubr.f32.mxu1 %v1454_v3 }
 0x1fe   :  { %1431 = vmatmul.mubr.msk.f32.gmra.mxu0 %vm437_vm1, %v725_v44  ;;  %1439 = vmatmul.mubr.msk.f32.gmra.mxu1 %vm437_vm1, %v725_v44 }
 0x1ff   :  { %900 = vmatprep.mubr.f32.mxu0 %v1454_v3  ;;  %1013 = vmatprep.mubr.f32.mxu1 %v1454_v3 }
 0x202   :  { %1432 = vmatmul.mubr.msk.f32.gmra.mxu0 %vm437_vm1, %v726_v45  ;;  %1440 = vmatmul.mubr.msk.f32.gmra.mxu1 %vm437_vm1, %v726_v45 }
 0x203   :  { %906 = vmatprep.mubr.f32.mxu0 %v1454_v3  ;;  %1019 = vmatprep.mubr.f32.mxu1 %v1454_v3 }
 0x206   :  { %1433 = vmatmul.mubr.msk.f32.gmra.mxu0 %vm437_vm1, %v727_v15  ;;  %1441 = vmatmul.mubr.msk.f32.gmra.mxu1 %vm437_vm1, %v727_v15 }
 0x207   :  { %1132 = vmatprep.mubr.f32.mxu0 %v1454_v3  ;;  %1203 = vmatprep.mubr.f32.mxu1 %v1454_v3 }
 0x2aa   :  { %v1848_v16 = vpop.f32.mrf.mxu0  ;;  %v1850_v42 = vpop.f32.mrf.mxu1 }
 0x2ac   :  { %v1852_v43 = vpop.f32.mrf.mxu0  ;;  %v1854_v17 = vpop.f32.mrf.mxu1 }
 0x2ae   :  { %v1856_v18 = vpop.f32.mrf.mxu0  ;;  %v1858_v40 = vpop.f32.mrf.mxu1 }
 0x2b0   :  { %v1860_v41 = vpop.f32.mrf.mxu0  ;;  %v1862_v19 = vpop.f32.mrf.mxu1 }
 0x2b2   :  { %v1864_v20 = vpop.f32.mrf.mxu0  ;;  %v1866_v21 = vpop.f32.mrf.mxu1 }
 0x2b4   :  { %v1868_v22 = vpop.f32.mrf.mxu0  ;;  %v1870_v23 = vpop.f32.mrf.mxu1 }
 0x2b6   :  { %v884_v24 = vpop.f32.mrf.mxu0  ;;  %v997_v25 = vpop.f32.mrf.mxu1 }
 0x2b8   :  { %v886_v56 = vpop.f32.mrf.mxu0  ;;  %v999_v57 = vpop.f32.mrf.mxu1 }
 0x2b9   :  { %v887_v15 = vadd.f32 %v886_v56, %v754_v10  ;;  %v744_v56 = vpop.permute.xlu0 %743 }
 0x2ba   :  { %v890_v0 = vpop.f32.mrf.mxu0  ;;  %v1003_v1 = vpop.f32.mrf.mxu1 }
 0x2bb   :  { %v891_v13 = vadd.f32 %v890_v0, %v759_v53  ;;  %v1004_v14 = vadd.f32 %v1003_v1, %v759_v53  ;;  %v994_v0 = vadd.f32 %v1870_v23, %v749_v47  ;;  %v739_v23 = vpop.permute.xlu1 %738 }
 0x2bc   :  { %v892_v58 = vpop.f32.mrf.mxu0  ;;  %v1005_v59 = vpop.f32.mrf.mxu1 }
 0x2bd   :  { %v893_v46 = vadd.f32 %v892_v58, %v759_v53  ;;  %v1006_v26 = vadd.f32 %v1005_v59, %v759_v53  ;;  %v998_v58 = vadd.f32 %v997_v25, %v754_v10  ;;  %v875_v25 = vadd.f32 %v1860_v41, %v744_v56 }
 0x2be   :  { %v896_v2 = vpop.f32.mrf.mxu0  ;;  %v1009_v54 = vpop.f32.mrf.mxu1 }
 0x2bf   :  { %v897_v49 = vadd.f32 %v896_v2, %v764_v39  ;;  %v1010_v28 = vadd.f32 %v1009_v54, %v764_v39  ;;  %v885_v54 = vadd.f32 %v884_v24, %v754_v10  ;;  %v1043_v1 = vmax.f32 %v893_v46, 0.0 }
 0x2c0   :  { %v898_v61 = vpop.f32.mrf.mxu0  ;;  %v1011_v55 = vpop.f32.mrf.mxu1  ;;  %v1044_v24 = vmax.f32 %v1004_v14, 0.0  ;;  %v1040_v53 = vmax.f32 %v998_v58, 0.0 }
 0x2c1   :  { %v899_v9 = vadd.f32 %v898_v61, %v764_v39  ;;  %v1012_v48 = vadd.f32 %v1011_v55, %v764_v39  ;;  %v1046_v59 = vmax.f32 %v897_v49, 0.0  ;;  %v1048_v55 = vmax.f32 %v1010_v28, 0.0 }
 0x2c2   :  { %v902_v63 = vpop.f32.mrf.mxu0  ;;  %v1015_v4 = vpop.f32.mrf.mxu1 }
 0x2c3   :  { %v903_v8 = vadd.f32 %v902_v63, %v769_v62  ;;  %v1016_v33 = vadd.f32 %v1015_v4, %v769_v62  ;;  %v1047_v61 = vmax.f32 %v899_v9, 0.0  ;;  %v1049_v2 = vmax.f32 %v1012_v48, 0.0  ;;  %v1063_v9 = vpop.permute.xlu0 %1062 }
 0x2c4   :  { %v904_v5 = vpop.f32.mrf.mxu0  ;;  %v1017_v38 = vpop.f32.mrf.mxu1  ;;  %v1045_v63 = vmax.f32 %v1006_v26, 0.0  ;;  %v992_v4 = vadd.f32 %v1866_v21, %v749_v47  ;;  %v869_v21 = vadd.f32 %v1852_v43, %v739_v23 }
 0x2c5   :  { %v905_v7 = vadd.f32 %v904_v5, %v769_v62  ;;  %v1018_v35 = vadd.f32 %v1017_v38, %v769_v62  ;;  %v1050_v44 = vmax.f32 %v903_v8, 0.0  ;;  %v1052_v45 = vmax.f32 %v1016_v33, 0.0 }
 0x2c6   :  { %v908_v52 = vpop.f32.mrf.mxu0  ;;  %v1021_v36 = vpop.f32.mrf.mxu1  ;;  %v881_v62 = vadd.f32 %v1868_v22, %v749_v47  ;;  %v1042_v5 = vmax.f32 %v891_v13, 0.0  ;;  %v988_v38 = vadd.f32 %v1862_v19, %v744_v56  ;;  %v1039_v22 = vmax.f32 %v887_v15, 0.0 }
 0x2c7   :  { %v909_v37 = vadd.f32 %v908_v52, %v774_v60  ;;  %v1022_v6 = vadd.f32 %v1021_v36, %v774_v60  ;;  %v1051_v27 = vmax.f32 %v905_v7, 0.0  ;;  %v1053_v12 = vmax.f32 %v1018_v35, 0.0 }
 0x2c8   :  { %v910_v50 = vpop.f32.mrf.mxu0  ;;  %v1023_v34 = vpop.f32.mrf.mxu1  ;;  %v873_v52 = vadd.f32 %v1856_v18, %v744_v56  ;;  %v986_v36 = vadd.f32 %v1858_v40, %v744_v56  ;;  %v1035_v41 = vmax.f32 %v881_v62, 0.0  ;;  %v867_v19 = vadd.f32 %v1848_v16, %v739_v23 }
 0x2c9   :  { %v911_v51 = vadd.f32 %v910_v50, %v774_v60  ;;  %v1024_v32 = vadd.f32 %v1023_v34, %v774_v60  ;;  %v1054_v29 = vmax.f32 %v909_v37, 0.0  ;;  %v1056_v11 = vmax.f32 %v1022_v6, 0.0 }
 0x2ca   :  { %v1000_v60 = vadd.f32 %v999_v57, %v754_v10  ;;  %v879_v57 = vadd.f32 %v1864_v20, %v749_v47  ;;  %v1038_v20 = vmax.f32 %v885_v54, 0.0  ;;  %v982_v37 = vadd.f32 %v1854_v17, %v739_v23  ;;  %v1219_v47 = vpop.permute.xlu1 %1218 }
 0x2cb   :  { %v1055_v30 = vmax.f32 %v911_v51, 0.0  ;;  %v1057_v31 = vmax.f32 %v1024_v32, 0.0  ;;  %v1037_v6 = vmax.f32 %v994_v0, 0.0  ;;  %v980_v50 = vadd.f32 %v1850_v42, %v739_v23  ;;  %v1058_v42 = vld [vmem:[%s1909_s7] sm:$0x3f] }
 0x2cc   :  { %v1041_v39 = vmax.f32 %v1000_v60, 0.0  ;;  %v1034_v34 = vmax.f32 %v879_v57, 0.0  ;;  %v1036_v18 = vmax.f32 %v992_v4, 0.0  ;;  %v1031_v40 = vmax.f32 %v875_v25, 0.0 }
 0x2cd   :  { %1084 = vmatprep.subr.mxu0 %v1055_v30  ;;  %1155 = vmatprep.subr.mxu1 %v1057_v31  ;;  %v1033_v7 = vmax.f32 %v988_v38, 0.0  ;;  %v1030_v35 = vmax.f32 %v873_v52, 0.0  ;;  %v1032_v43 = vmax.f32 %v986_v36, 0.0  ;;  %v1027_v17 = vmax.f32 %v869_v21, 0.0 }
 0x2ce   :  { %1085 = vmatpush1.msra.mxu0 %v1054_v29  ;;  %1156 = vmatpush1.msra.mxu1 %v1056_v11  ;;  %v1029_v51 = vmax.f32 %v982_v37, 0.0  ;;  %v1026_v32 = vmax.f32 %v867_v19, 0.0  ;;  %v1028_v16 = vmax.f32 %v980_v50, 0.0 }
 0x2cf   :  { %1086 = vmatprep.subr.mxu0 %v1051_v27  ;;  %1157 = vmatprep.subr.mxu1 %v1053_v12  ;;  %v1214_v27 = vld [vmem:[%s1910_s9] sm:$0x7] }
 0x2d0   :  { %1087 = vmatpush1.msra.mxu0 %v1050_v44  ;;  %1158 = vmatpush1.msra.mxu1 %v1052_v45 }
 0x2d1   :  { %1088 = vmatprep.subr.mxu0 %v1047_v61  ;;  %1159 = vmatprep.subr.mxu1 %v1049_v2 }
 0x2d2   :  { %1089 = vmatpush1.msra.mxu0 %v1046_v59  ;;  %1160 = vmatpush1.msra.mxu1 %v1048_v55 }
 0x2d3   :  { %1090 = vmatprep.subr.mxu0 %v1043_v1  ;;  %1161 = vmatprep.subr.mxu1 %v1045_v63 }
 0x2d4   :  { %1091 = vmatpush1.msra.mxu0 %v1042_v5  ;;  %1162 = vmatpush1.msra.mxu1 %v1044_v24 }
 0x2d5   :  { %1092 = vmatprep.subr.mxu0 %v1039_v22  ;;  %1163 = vmatprep.subr.mxu1 %v1041_v39 }
 0x2d6   :  { %1093 = vmatpush1.msra.mxu0 %v1038_v20  ;;  %1164 = vmatpush1.msra.mxu1 %v1040_v53 }
 0x2d7   :  { %1094 = vmatprep.subr.mxu0 %v1035_v41  ;;  %1165 = vmatprep.subr.mxu1 %v1037_v6 }
 0x2d8   :  { %1095 = vmatpush1.msra.mxu0 %v1034_v34  ;;  %1166 = vmatpush1.msra.mxu1 %v1036_v18 }
 0x2d9   :  { %1096 = vmatprep.subr.mxu0 %v1031_v40  ;;  %1167 = vmatprep.subr.mxu1 %v1033_v7 }
 0x2da   :  { %1097 = vmatpush1.msra.mxu0 %v1030_v35  ;;  %1168 = vmatpush1.msra.mxu1 %v1032_v43 }
 0x2db   :  { %1098 = vmatprep.subr.mxu0 %v1027_v17  ;;  %1169 = vmatprep.subr.mxu1 %v1029_v51 }
 0x2dc   :  { %1099 = vmatpush1.msra.mxu0 %v1026_v32  ;;  %1170 = vmatpush1.msra.mxu1 %v1028_v16 }
 0x2dd   :  { %1442 = vmatmul.mubr.msk.f32.vlgmr.msra.gmra.mxu0 %vm437_vm1, %v1058_v42  ;;  %1443 = vmatmul.mubr.msk.f32.vlgmr.msra.gmra.mxu1 %vm437_vm1, %v1058_v42 }
 0x2de   :  { %1302 = vmatprep.mubr.f32.mxu0 %v1454_v3  ;;  %1373 = vmatprep.mubr.f32.mxu1 %v1454_v3 }
 0x39d   :  { %v1134_v8 = vpop.f32.mrf.mxu0  ;;  %v1205_v33 = vpop.f32.mrf.mxu1 }
 0x39e   :  { %v1135_v48 = vadd.f32 %v1134_v8, %v1063_v9  ;;  %v1206_v30 = vadd.f32 %v1205_v33, %v1063_v9 }
 0x39f   :  { %v1136_v31 = vpop.f32.mrf.mxu0  ;;  %v1207_v10 = vpop.f32.mrf.mxu1 }
 0x3a0   :  { %v1137_v49 = vadd.f32 %v1136_v31, %v1063_v9  ;;  %v1208_v28 = vadd.f32 %v1207_v10, %v1063_v9  ;;  %v1210_v46 = vmax.f32 %v1135_v48, 0.0  ;;  %v1212_v26 = vmax.f32 %v1206_v30, 0.0 }
 0x3a2   :  { %v1211_v29 = vmax.f32 %v1137_v49, 0.0  ;;  %v1213_v11 = vmax.f32 %v1208_v28, 0.0 }
 0x3a4   :  { %1444 = vmatprep.subr.msk.mxu0 %vm1225_vm2, %v1211_v29  ;;  %1447 = vmatprep.subr.msk.mxu1 %vm1225_vm2, %v1213_v11 }
 0x3a5   :  { %1445 = vmatpush1.msk.msra.mxu0 %vm1225_vm2, %v1210_v46  ;;  %1448 = vmatpush1.msk.msra.mxu1 %vm1225_vm2, %v1212_v26 }
 0x3a6   :  { %1446 = vmatmul.mubr.msk.f32.vlgmr.msra.gmra.mxu0 %vm1221_vm3, %v1214_v27  ;;  %1449 = vmatmul.mubr.msk.f32.vlgmr.msra.gmra.mxu1 %vm1221_vm3, %v1214_v27 }
 0x466   :  { %v1304_v3 = vpop.f32.mrf.mxu0  ;;  %v1375_v12 = vpop.f32.mrf.mxu1 }
 0x467   :  { %v1305_v44 = vadd.f32 %v1304_v3, %v1219_v47  ;;  %v1376_v45 = vadd.f32 %v1375_v12, %v1219_v47 }
 0x468   :  { %v1306_v13 = vpop.f32.mrf.mxu0  ;;  %v1377_v14 = vpop.f32.mrf.mxu1 }
 0x469   :  { %v1307_v15 = vadd.f32 %v1306_v13, %v1219_v47  ;;  %v1378_v60 = vadd.f32 %v1377_v14, %v1219_v47 }
 0x46b   :  { %v1384_v61 = vcombine.low %v1305_v44, %v1307_v15  ;;  %v1385_v2 = vcombine.low %v1376_v45, %v1378_v60 }
 0x46d   :  { %1388 = vst [vmem:[%s1911_s11] sm:$0x77] %v1384_v61  ;;  %1389 = vst [vmem:[%s1911_s11 + $0x8] sm:$0x77] %v1385_v2 }

</bundles_post_ra>
